<compile_context>
chip_gen: v7x
topology: tpu7x:2x2x1
jax: 0.10.0
libtpu: 0.0.40
codegen_flags: <defaults>
</compile_context>

<pallas_src>
import math

import jax
import jax.numpy as jnp
from jax.experimental import pallas as pl
from jax.experimental.pallas import tpu as pltpu

# ----------------------------- config ---------------------------------------
B = 2           # batch
S = 8           # sequence length
D = 32          # hidden_dim
H = 4           # num_heads
DH = D // H     # head dim
FF = 4 * D      # feed-forward dim
G = B * H       # attention batch (batch x heads)
BS = B * S      # rows after folding batch into the row dim
PACK = max(FF, 3 * D)   # lane width of the packed small-vector buffer (=128)
LN_EPS = 1e-5

SELU_ALPHA = 1.6732632423543772
SELU_SCALE = 1.0507009873554805


def _layer_norm(y, gamma, beta):
    mean = jnp.mean(y, axis=-1, keepdims=True)
    var = jnp.mean((y - mean) ** 2, axis=-1, keepdims=True)   # biased, like torch
    return (y - mean) * jax.lax.rsqrt(var + LN_EPS) * gamma + beta


def _selu(x):
    # exp only on the non-positive branch -> robust (no inf in unselected branch)
    return SELU_SCALE * jnp.where(
        x > 0, x, SELU_ALPHA * (jnp.exp(jnp.minimum(x, 0.0)) - 1.0))


# ----------------------------- kernel ----------------------------------------
def transformer_layer_kernel(
    x_ref,        # (BS, D)    f32
    wqkv_ref,     # (D, 3D)    bf16  fused Wqkv^T, columns ordered (head, {q,k,v}, dh)
    wo_ref,       # (D, D)     bf16  Wo^T
    w1_ref,       # (D, FF)    bf16  W1^T
    w2_ref,       # (FF, D)    bf16  W2^T
    vecs_ref,     # (8, PACK)  f32   packed biases / LayerNorm affine params
    out_ref,      # (BS, D)    f32
):
    bf16 = jnp.bfloat16
    x = x_ref[...]                                    # (BS, D) f32

    # Packed small vectors (one DMA): static slices of the VMEM tile.
    b1   = vecs_ref[0:1, :FF]                         # (1, FF)
    bqkv = vecs_ref[1:2, :3 * D]                      # (1, 3D)
    bo   = vecs_ref[2:3, :D]                          # (1, D)
    b2   = vecs_ref[3:4, :D]
    g1   = vecs_ref[4:5, :D]
    be1  = vecs_ref[5:6, :D]
    g2   = vecs_ref[6:7, :D]
    be2  = vecs_ref[7:8, :D]

    # --- fused QKV projection: a single MXU push ------------------------------
    qkv = jnp.dot(x.astype(bf16), wqkv_ref[...],
                  preferred_element_type=jnp.float32) + bqkv       # (BS, 3D)

    # --- head split: leading-dim reshape + static lane slices + leading concat
    qkv3 = qkv.reshape(B, S, 3 * D)                                # rows only (free)
    qkv_g = jnp.concatenate(
        [qkv3[:, :, h * (3 * DH):(h + 1) * (3 * DH)] for h in range(H)],
        axis=0)                                                    # (G, S, 3*DH), g = h*B + b
    q = qkv_g[:, :, :DH]
    k = qkv_g[:, :, DH:2 * DH]
    v = qkv_g[:, :, 2 * DH:]

    # --- scaled dot-product attention (softmax in f32) ------------------------
    scale = 1.0 / math.sqrt(DH)
    s = jnp.einsum('gqd,gkd->gqk', q.astype(bf16), k.astype(bf16),
                   preferred_element_type=jnp.float32) * scale     # (G, S, S)
    s = s - jnp.max(s, axis=-1, keepdims=True)
    p = jnp.exp(s)
    p = p * pl.reciprocal(jnp.sum(p, axis=-1, keepdims=True), approx=True)
    ctx = jnp.einsum('gqk,gkd->gqd', p.astype(bf16), v.astype(bf16),
                     preferred_element_type=jnp.float32)           # (G, S, DH)

    # --- merge heads (lane concat) + single output-projection matmul ----------
    attn = jnp.concatenate([ctx[h * B:(h + 1) * B] for h in range(H)],
                           axis=-1).reshape(BS, D)                 # (BS, D), torch order
    attn = jnp.dot(attn.astype(bf16), wo_ref[...],
                   preferred_element_type=jnp.float32) + bo        # head-sum on MXU

    # --- residual + LayerNorm 1 (dropout == identity in eval) -----------------
    y = _layer_norm(x + attn, g1, be1)                             # (BS, D) f32

    # --- feed forward: Linear -> SELU -> Linear --------------------------------
    h1 = jnp.dot(y.astype(bf16), w1_ref[...],
                 preferred_element_type=jnp.float32) + b1          # (BS, FF)
    h1 = _selu(h1)
    ff = jnp.dot(h1.astype(bf16), w2_ref[...],
                 preferred_element_type=jnp.float32) + b2          # (BS, D)

    # --- residual + LayerNorm 2 -------------------------------------------------
    # TODO(synk): output last dim is 32 (<128 lanes) -> masked stores; a
    # lane-dense (1, BS*D) layout would need an in-kernel relayout, so skipped.
    out_ref[...] = _layer_norm(y + ff, g2, be2)


# ----------------------------- wrapper ----------------------------------------
@jax.jit
def transformer_layer(x, params):
    (wqkv, bqkv, wo, bo, w1, b1, w2, b2, g1, be1, g2, be2) = params
    bf16 = jnp.bfloat16

    # Fused QKV weight: (D, 3D), columns ordered (head, {q,k,v}, dh) so the
    # kernel's per-head lane slices are contiguous.
    wq = wqkv[:D].reshape(H, DH, D)
    wk = wqkv[D:2 * D].reshape(H, DH, D)
    wv = wqkv[2 * D:].reshape(H, DH, D)
    wqkv_f = jnp.stack([wq, wk, wv], axis=1).reshape(3 * D, D).T.astype(bf16)

    bq = bqkv[0, :D].reshape(H, DH)
    bk = bqkv[0, D:2 * D].reshape(H, DH)
    bv = bqkv[0, 2 * D:].reshape(H, DH)
    bqkv_f = jnp.stack([bq, bk, bv], axis=1).reshape(3 * D)

    # Pack all small f32 vectors into one (8, PACK) buffer -> a single DMA.
    rows = (b1[0], bqkv_f, bo[0], b2[0], g1[0], be1[0], g2[0], be2[0])
    vecs = jnp.zeros((8, PACK), jnp.float32)
    for i, r in enumerate(rows):
        vecs = vecs.at[i, :r.shape[0]].set(r)

    args = (x.reshape(BS, D),          # batch folded into rows
            wqkv_f,                    # (D, 3D)  bf16
            wo.T.astype(bf16),         # (D, D)   bf16
            w1.T.astype(bf16),         # (D, FF)  bf16
            w2.T.astype(bf16),         # (FF, D)  bf16
            vecs)                      # (8, PACK) f32

    # Single grid step: every operand is a whole-array VMEM block, so no grid /
    # pipelining machinery is generated at all.
    # TODO(synk): on v7x (2 TensorCores) benchmark against grid=(B,) "parallel";
    # at ~1-2 us of total work the folded single step likely still wins.
    vmem = pltpu.MemorySpace.VMEM
    out2d = pl.pallas_call(
        transformer_layer_kernel,
        out_shape=jax.ShapeDtypeStruct((BS, D), jnp.float32),
        in_specs=[pl.BlockSpec(memory_space=vmem) for _ in args],
        out_specs=pl.BlockSpec(memory_space=vmem),
    )(*args)
    return out2d.reshape(B, S, D)


def init_params(key):
    ks = jax.random.split(key, 8)
    sc = 0.1
    wqkv = sc * jax.random.normal(ks[0], (3 * D, D), jnp.float32)
    bqkv = sc * jax.random.normal(ks[1], (1, 3 * D), jnp.float32)
    wo = sc * jax.random.normal(ks[2], (D, D), jnp.float32)
    bo = sc * jax.random.normal(ks[3], (1, D), jnp.float32)
    w1 = sc * jax.random.normal(ks[4], (FF, D), jnp.float32)
    b1 = sc * jax.random.normal(ks[5], (1, FF), jnp.float32)
    w2 = sc * jax.random.normal(ks[6], (D, FF), jnp.float32)
    b2 = sc * jax.random.normal(ks[7], (1, D), jnp.float32)
    # LayerNorm affine params match nn.LayerNorm default init (ones / zeros).
    g1 = jnp.ones((1, D), jnp.float32); be1 = jnp.zeros((1, D), jnp.float32)
    g2 = jnp.ones((1, D), jnp.float32); be2 = jnp.zeros((1, D), jnp.float32)
    return (wqkv, bqkv, wo, bo, w1, b1, w2, b2, g1, be1, g2, be2)


# pure-JAX f32 reference (same math, torch layout) for a sanity check
def reference(x, params):
    (wqkv, bqkv, wo, bo, w1, b1, w2, b2, g1, be1, g2, be2) = params
    qkv = x @ wqkv.T + bqkv[0]
    q, k, v = qkv[..., :D], qkv[..., D:2 * D], qkv[..., 2 * D:]
    qh = q.reshape(B, S, H, DH).transpose(0, 2, 1, 3)
    kh = k.reshape(B, S, H, DH).transpose(0, 2, 1, 3)
    vh = v.reshape(B, S, H, DH).transpose(0, 2, 1, 3)
    sc = jnp.einsum("bhqd,bhkd->bhqk", qh, kh) / math.sqrt(DH)
    p = jax.nn.softmax(sc, axis=-1)
    a = jnp.einsum("bhqk,bhkd->bhqd", p, vh).transpose(0, 2, 1, 3).reshape(B, S, D)
    a = a @ wo.T + bo[0]
    y = x + a
    y = (y - y.mean(-1, keepdims=True)) / jnp.sqrt(y.var(-1, keepdims=True) + LN_EPS) * g1[0] + be1[0]
    h = _selu(y @ w1.T + b1[0])
    f = h @ w2.T + b2[0]
    z = y + f
    z = (z - z.mean(-1, keepdims=True)) / jnp.sqrt(z.var(-1, keepdims=True) + LN_EPS) * g2[0] + be2[0]
    return z


if __name__ == "__main__":
    key = jax.random.PRNGKey(0)
    kx, kp = jax.random.split(key)
    x = jax.random.normal(kx, (B, S, D), jnp.float32)
    params = init_params(kp)

    out = jax.block_until_ready(transformer_layer(x, params))
    ref = reference(x, params)

    assert out.shape == (B, S, D)
    max_err = float(jnp.max(jnp.abs(out - ref)))
    # MXU inputs are bf16 and the softmax denominator uses the EUP approx
    # reciprocal, so tolerance is loosened vs. a pure-f32 comparison.
    assert jnp.allclose(out, ref, atol=5e-2, rtol=5e-2), max_err
    print("KERNEL_OK")
</pallas_src>

<mosaic_0001>
module attributes {stable_mosaic.version = 11 : i64} {
  func.func @transformer_layer_kernel(%arg0: memref<16x32xf32, #tpu.memory_space<vmem>>, %arg1: memref<32x96xbf16, #tpu.memory_space<vmem>>, %arg2: memref<32x32xbf16, #tpu.memory_space<vmem>>, %arg3: memref<32x128xbf16, #tpu.memory_space<vmem>>, %arg4: memref<128x32xbf16, #tpu.memory_space<vmem>>, %arg5: memref<8x128xf32, #tpu.memory_space<vmem>>, %arg6: memref<16x32xf32, #tpu.memory_space<vmem>>) attributes {dimension_semantics = [], scalar_prefetch = 0 : i64, scratch_operands = 0 : i64, tpu.core_type = #tpu.core_type<tc>} {
    %c0 = arith.constant 0 : index
    %c0_0 = arith.constant 0 : index
    %0 = vector.load %arg0[%c0, %c0_0] : memref<16x32xf32, #tpu.memory_space<vmem>>, vector<16x32xf32>
    %c0_1 = arith.constant 0 : index
    %c0_2 = arith.constant 0 : index
    %1 = vector.load %arg5[%c0_1, %c0_2] : memref<8x128xf32, #tpu.memory_space<vmem>>, vector<1x128xf32>
    %c1 = arith.constant 1 : index
    %c0_3 = arith.constant 0 : index
    %2 = vector.load %arg5[%c1, %c0_3] : memref<8x128xf32, #tpu.memory_space<vmem>>, vector<1x96xf32>
    %c2 = arith.constant 2 : index
    %c0_4 = arith.constant 0 : index
    %3 = vector.load %arg5[%c2, %c0_4] : memref<8x128xf32, #tpu.memory_space<vmem>>, vector<1x32xf32>
    %c3 = arith.constant 3 : index
    %c0_5 = arith.constant 0 : index
    %4 = vector.load %arg5[%c3, %c0_5] : memref<8x128xf32, #tpu.memory_space<vmem>>, vector<1x32xf32>
    %c4 = arith.constant 4 : index
    %c0_6 = arith.constant 0 : index
    %5 = vector.load %arg5[%c4, %c0_6] : memref<8x128xf32, #tpu.memory_space<vmem>>, vector<1x32xf32>
    %c5 = arith.constant 5 : index
    %c0_7 = arith.constant 0 : index
    %6 = vector.load %arg5[%c5, %c0_7] : memref<8x128xf32, #tpu.memory_space<vmem>>, vector<1x32xf32>
    %c6 = arith.constant 6 : index
    %c0_8 = arith.constant 0 : index
    %7 = vector.load %arg5[%c6, %c0_8] : memref<8x128xf32, #tpu.memory_space<vmem>>, vector<1x32xf32>
    %c7 = arith.constant 7 : index
    %c0_9 = arith.constant 0 : index
    %8 = vector.load %arg5[%c7, %c0_9] : memref<8x128xf32, #tpu.memory_space<vmem>>, vector<1x32xf32>
    %9 = arith.truncf %0 : vector<16x32xf32> to vector<16x32xbf16>
    %c0_10 = arith.constant 0 : index
    %c0_11 = arith.constant 0 : index
    %10 = vector.load %arg1[%c0_10, %c0_11] : memref<32x96xbf16, #tpu.memory_space<vmem>>, vector<32x96xbf16>
    %cst = arith.constant dense<0.000000e+00> : vector<16x96xf32>
    %11 = tpu.matmul %9, %10, %cst {dimension_numbers = #tpu.dot_dimension_numbers<[1], [0], [0], [1], [0, 0, 1, 1], [], []>} : vector<16x32xbf16>, vector<32x96xbf16>, vector<16x96xf32> -> vector<16x96xf32>
    %12 = vector.broadcast %2 : vector<1x96xf32> to vector<16x96xf32>
    %13 = arith.addf %11, %12 : vector<16x96xf32>
    %14 = vector.shape_cast %13 : vector<16x96xf32> to vector<2x8x96xf32>
    %15 = vector.extract_strided_slice %14 {offsets = [0, 0, 0], sizes = [2, 8, 24], strides = [1, 1, 1]} : vector<2x8x96xf32> to vector<2x8x24xf32>
    %16 = vector.extract_strided_slice %14 {offsets = [0, 0, 24], sizes = [2, 8, 24], strides = [1, 1, 1]} : vector<2x8x96xf32> to vector<2x8x24xf32>
    %17 = vector.extract_strided_slice %14 {offsets = [0, 0, 48], sizes = [2, 8, 24], strides = [1, 1, 1]} : vector<2x8x96xf32> to vector<2x8x24xf32>
    %18 = vector.extract_strided_slice %14 {offsets = [0, 0, 72], sizes = [2, 8, 24], strides = [1, 1, 1]} : vector<2x8x96xf32> to vector<2x8x24xf32>
    %19 = tpu.concatenate %15, %16, %17, %18 in 0 : vector<2x8x24xf32>, vector<2x8x24xf32>, vector<2x8x24xf32>, vector<2x8x24xf32> -> vector<8x8x24xf32>
    %20 = vector.extract_strided_slice %19 {offsets = [0, 0, 0], sizes = [8, 8, 8], strides = [1, 1, 1]} : vector<8x8x24xf32> to vector<8x8x8xf32>
    %21 = vector.extract_strided_slice %19 {offsets = [0, 0, 8], sizes = [8, 8, 8], strides = [1, 1, 1]} : vector<8x8x24xf32> to vector<8x8x8xf32>
    %22 = vector.extract_strided_slice %19 {offsets = [0, 0, 16], sizes = [8, 8, 8], strides = [1, 1, 1]} : vector<8x8x24xf32> to vector<8x8x8xf32>
    %23 = arith.truncf %20 : vector<8x8x8xf32> to vector<8x8x8xbf16>
    %24 = arith.truncf %21 : vector<8x8x8xf32> to vector<8x8x8xbf16>
    "tpu.trace_start"() <{level = 10 : i32, message = "gqd,gkd->gqk"}> : () -> ()
    %cst_12 = arith.constant dense<0.000000e+00> : vector<8x8x8xf32>
    %25 = tpu.matmul %23, %24, %cst_12 {dimension_numbers = #tpu.dot_dimension_numbers<[2], [2], [1], [1], [0, 0, 0, 1, 1, 1], [0], [0]>} : vector<8x8x8xbf16>, vector<8x8x8xbf16>, vector<8x8x8xf32> -> vector<8x8x8xf32>
    "tpu.trace_stop"() : () -> ()
    %cst_13 = arith.constant 0.353553385 : f32
    %26 = vector.broadcast %cst_13 : f32 to vector<8x8x8xf32>
    %27 = arith.mulf %25, %26 : vector<8x8x8xf32>
    %cst_14 = arith.constant dense<0xFF800000> : vector<8x8xf32>
    %28 = vector.multi_reduction <maximumf>, %27, %cst_14 [2] : vector<8x8x8xf32> to vector<8x8xf32>
    %29 = vector.shape_cast %28 : vector<8x8xf32> to vector<8x8x1xf32>
    %30 = vector.broadcast %29 : vector<8x8x1xf32> to vector<8x8x8xf32>
    %31 = arith.subf %27, %30 : vector<8x8x8xf32>
    %32 = math.exp %31 : vector<8x8x8xf32>
    %cst_15 = arith.constant dense<0.000000e+00> : vector<8x8xf32>
    %33 = vector.multi_reduction <add>, %32, %cst_15 [2] : vector<8x8x8xf32> to vector<8x8xf32>
    %34 = vector.shape_cast %33 : vector<8x8xf32> to vector<8x8x1xf32>
    %35 = tpu.reciprocal %34 {approx = true} : vector<8x8x1xf32> -> vector<8x8x1xf32>
    %36 = vector.broadcast %35 : vector<8x8x1xf32> to vector<8x8x8xf32>
    %37 = arith.mulf %32, %36 : vector<8x8x8xf32>
    %38 = arith.truncf %37 : vector<8x8x8xf32> to vector<8x8x8xbf16>
    %39 = arith.truncf %22 : vector<8x8x8xf32> to vector<8x8x8xbf16>
    "tpu.trace_start"() <{level = 10 : i32, message = "gqk,gkd->gqd"}> : () -> ()
    %cst_16 = arith.constant dense<0.000000e+00> : vector<8x8x8xf32>
    %40 = tpu.matmul %38, %39, %cst_16 {dimension_numbers = #tpu.dot_dimension_numbers<[2], [1], [1], [2], [0, 0, 0, 1, 1, 2], [0], [0]>} : vector<8x8x8xbf16>, vector<8x8x8xbf16>, vector<8x8x8xf32> -> vector<8x8x8xf32>
    "tpu.trace_stop"() : () -> ()
    %41 = vector.extract_strided_slice %40 {offsets = [0, 0, 0], sizes = [2, 8, 8], strides = [1, 1, 1]} : vector<8x8x8xf32> to vector<2x8x8xf32>
    %42 = vector.extract_strided_slice %40 {offsets = [2, 0, 0], sizes = [2, 8, 8], strides = [1, 1, 1]} : vector<8x8x8xf32> to vector<2x8x8xf32>
    %43 = vector.extract_strided_slice %40 {offsets = [4, 0, 0], sizes = [2, 8, 8], strides = [1, 1, 1]} : vector<8x8x8xf32> to vector<2x8x8xf32>
    %44 = vector.extract_strided_slice %40 {offsets = [6, 0, 0], sizes = [2, 8, 8], strides = [1, 1, 1]} : vector<8x8x8xf32> to vector<2x8x8xf32>
    %45 = tpu.concatenate %41, %42, %43, %44 in 2 : vector<2x8x8xf32>, vector<2x8x8xf32>, vector<2x8x8xf32>, vector<2x8x8xf32> -> vector<2x8x32xf32>
    %46 = vector.shape_cast %45 : vector<2x8x32xf32> to vector<16x32xf32>
    %47 = arith.truncf %46 : vector<16x32xf32> to vector<16x32xbf16>
    %c0_17 = arith.constant 0 : index
    %c0_18 = arith.constant 0 : index
    %48 = vector.load %arg2[%c0_17, %c0_18] : memref<32x32xbf16, #tpu.memory_space<vmem>>, vector<32x32xbf16>
    %cst_19 = arith.constant dense<0.000000e+00> : vector<16x32xf32>
    %49 = tpu.matmul %47, %48, %cst_19 {dimension_numbers = #tpu.dot_dimension_numbers<[1], [0], [0], [1], [0, 0, 1, 1], [], []>} : vector<16x32xbf16>, vector<32x32xbf16>, vector<16x32xf32> -> vector<16x32xf32>
    %50 = vector.broadcast %3 : vector<1x32xf32> to vector<16x32xf32>
    %51 = arith.addf %49, %50 : vector<16x32xf32>
    %52 = arith.addf %0, %51 : vector<16x32xf32>
    %cst_20 = arith.constant dense<0.000000e+00> : vector<16xf32>
    %53 = vector.multi_reduction <add>, %52, %cst_20 [1] : vector<16x32xf32> to vector<16xf32>
    %54 = vector.shape_cast %53 : vector<16xf32> to vector<16x1xf32>
    %cst_21 = arith.constant 3.200000e+01 : f32
    %55 = vector.broadcast %cst_21 : f32 to vector<16x1xf32>
    %56 = arith.divf %54, %55 : vector<16x1xf32>
    %57 = vector.broadcast %56 : vector<16x1xf32> to vector<16x32xf32>
    %58 = arith.subf %52, %57 : vector<16x32xf32>
    %59 = arith.mulf %58, %58 : vector<16x32xf32>
    %cst_22 = arith.constant dense<0.000000e+00> : vector<16xf32>
    %60 = vector.multi_reduction <add>, %59, %cst_22 [1] : vector<16x32xf32> to vector<16xf32>
    %61 = vector.shape_cast %60 : vector<16xf32> to vector<16x1xf32>
    %cst_23 = arith.constant 3.200000e+01 : f32
    %62 = vector.broadcast %cst_23 : f32 to vector<16x1xf32>
    %63 = arith.divf %61, %62 : vector<16x1xf32>
    %64 = vector.broadcast %56 : vector<16x1xf32> to vector<16x32xf32>
    %65 = arith.subf %52, %64 : vector<16x32xf32>
    %cst_24 = arith.constant 9.99999974E-6 : f32
    %66 = vector.broadcast %cst_24 : f32 to vector<16x1xf32>
    %67 = arith.addf %63, %66 : vector<16x1xf32>
    %68 = math.rsqrt %67 : vector<16x1xf32>
    %69 = vector.broadcast %68 : vector<16x1xf32> to vector<16x32xf32>
    %70 = arith.mulf %65, %69 : vector<16x32xf32>
    %71 = vector.broadcast %5 : vector<1x32xf32> to vector<16x32xf32>
    %72 = arith.mulf %70, %71 : vector<16x32xf32>
    %73 = vector.broadcast %6 : vector<1x32xf32> to vector<16x32xf32>
    %74 = arith.addf %72, %73 : vector<16x32xf32>
    %75 = arith.truncf %74 : vector<16x32xf32> to vector<16x32xbf16>
    %c0_25 = arith.constant 0 : index
    %c0_26 = arith.constant 0 : index
    %76 = vector.load %arg3[%c0_25, %c0_26] : memref<32x128xbf16, #tpu.memory_space<vmem>>, vector<32x128xbf16>
    %cst_27 = arith.constant dense<0.000000e+00> : vector<16x128xf32>
    %77 = tpu.matmul %75, %76, %cst_27 {dimension_numbers = #tpu.dot_dimension_numbers<[1], [0], [0], [1], [0, 0, 1, 1], [], []>} : vector<16x32xbf16>, vector<32x128xbf16>, vector<16x128xf32> -> vector<16x128xf32>
    %78 = vector.broadcast %1 : vector<1x128xf32> to vector<16x128xf32>
    %79 = arith.addf %77, %78 : vector<16x128xf32>
    %cst_28 = arith.constant 0.000000e+00 : f32
    %80 = vector.broadcast %cst_28 : f32 to vector<16x128xf32>
    %81 = arith.cmpf ogt, %79, %80 : vector<16x128xf32>
    %cst_29 = arith.constant 0.000000e+00 : f32
    %82 = vector.broadcast %cst_29 : f32 to vector<16x128xf32>
    %83 = arith.minimumf %79, %82 : vector<16x128xf32>
    %84 = math.exp %83 : vector<16x128xf32>
    %cst_30 = arith.constant 1.000000e+00 : f32
    %85 = vector.broadcast %cst_30 : f32 to vector<16x128xf32>
    %86 = arith.subf %84, %85 : vector<16x128xf32>
    %cst_31 = arith.constant 1.67326319 : f32
    %87 = vector.broadcast %cst_31 : f32 to vector<16x128xf32>
    %88 = arith.mulf %87, %86 : vector<16x128xf32>
    %89 = arith.select %81, %79, %88 : vector<16x128xi1>, vector<16x128xf32>
    %cst_32 = arith.constant 1.05070102 : f32
    %90 = vector.broadcast %cst_32 : f32 to vector<16x128xf32>
    %91 = arith.mulf %90, %89 : vector<16x128xf32>
    %92 = arith.truncf %91 : vector<16x128xf32> to vector<16x128xbf16>
    %c0_33 = arith.constant 0 : index
    %c0_34 = arith.constant 0 : index
    %93 = vector.load %arg4[%c0_33, %c0_34] : memref<128x32xbf16, #tpu.memory_space<vmem>>, vector<128x32xbf16>
    %cst_35 = arith.constant dense<0.000000e+00> : vector<16x32xf32>
    %94 = tpu.matmul %92, %93, %cst_35 {dimension_numbers = #tpu.dot_dimension_numbers<[1], [0], [0], [1], [0, 0, 1, 1], [], []>} : vector<16x128xbf16>, vector<128x32xbf16>, vector<16x32xf32> -> vector<16x32xf32>
    %95 = vector.broadcast %4 : vector<1x32xf32> to vector<16x32xf32>
    %96 = arith.addf %94, %95 : vector<16x32xf32>
    %97 = arith.addf %74, %96 : vector<16x32xf32>
    %cst_36 = arith.constant dense<0.000000e+00> : vector<16xf32>
    %98 = vector.multi_reduction <add>, %97, %cst_36 [1] : vector<16x32xf32> to vector<16xf32>
    %99 = vector.shape_cast %98 : vector<16xf32> to vector<16x1xf32>
    %cst_37 = arith.constant 3.200000e+01 : f32
    %100 = vector.broadcast %cst_37 : f32 to vector<16x1xf32>
    %101 = arith.divf %99, %100 : vector<16x1xf32>
    %102 = vector.broadcast %101 : vector<16x1xf32> to vector<16x32xf32>
    %103 = arith.subf %97, %102 : vector<16x32xf32>
    %104 = arith.mulf %103, %103 : vector<16x32xf32>
    %cst_38 = arith.constant dense<0.000000e+00> : vector<16xf32>
    %105 = vector.multi_reduction <add>, %104, %cst_38 [1] : vector<16x32xf32> to vector<16xf32>
    %106 = vector.shape_cast %105 : vector<16xf32> to vector<16x1xf32>
    %cst_39 = arith.constant 3.200000e+01 : f32
    %107 = vector.broadcast %cst_39 : f32 to vector<16x1xf32>
    %108 = arith.divf %106, %107 : vector<16x1xf32>
    %109 = vector.broadcast %101 : vector<16x1xf32> to vector<16x32xf32>
    %110 = arith.subf %97, %109 : vector<16x32xf32>
    %cst_40 = arith.constant 9.99999974E-6 : f32
    %111 = vector.broadcast %cst_40 : f32 to vector<16x1xf32>
    %112 = arith.addf %108, %111 : vector<16x1xf32>
    %113 = math.rsqrt %112 : vector<16x1xf32>
    %114 = vector.broadcast %113 : vector<16x1xf32> to vector<16x32xf32>
    %115 = arith.mulf %110, %114 : vector<16x32xf32>
    %116 = vector.broadcast %7 : vector<1x32xf32> to vector<16x32xf32>
    %117 = arith.mulf %115, %116 : vector<16x32xf32>
    %118 = vector.broadcast %8 : vector<1x32xf32> to vector<16x32xf32>
    %119 = arith.addf %117, %118 : vector<16x32xf32>
    %c0_41 = arith.constant 0 : index
    %c0_42 = arith.constant 0 : index
    %120 = vector.load %arg6[%c0_41, %c0_42] : memref<16x32xf32, #tpu.memory_space<vmem>>, vector<16x32xf32>
    tpu.vector_store %arg6[%c0_41, %c0_42], %119 {strides = array<i32>} : memref<16x32xf32, #tpu.memory_space<vmem>>, vector<16x32xf32>,
    return
  }
}

</mosaic_0001>

<bundles_post_ra>
// kernel: squeeze.10
= control target key start
LH: loop header
LB: loop body
LE: loop exit
PB: predicated region body
PF: predicated region fallthrough
CT: control target
= control target key end

     0   :  { %s37_s8 = smov 104   ;;  %vm7_vm0 = vcmask 64512   ;;  %s38_s9 = smov 112   ;;  %s55_s0 = inlined_call_operand.vmem [shape: f32[32], index: 0, kind: input, shape index: {}]   ;;  %s56_s1 = inlined_call_operand.vmem [shape: f32[4,1,8], index: 1, kind: output, shape index: {}]  }
   0x1   :  { %v4_v0 = vld [vmem:[%s55_s0] sm:$0x1]  ;;  %s36_s0 = smov 120  }
   0x2   :  { %5 = vst [vmem:[#allocation1] sm:$0x1] %v4_v0 }
   0x9   :  { %v9_v1 = vld [vmem:[#allocation1] sm:$0x1]  }
   0xa   :  { %v21_v2 = vld [vmem:[#allocation1] sm:$0x1]   ;;  %10 = vrot.lane.b32.xlu0 %v9_v1, %s36_s0 }
   0xb   :  { %22 = vrot.lane.b32.xlu1 %v21_v2, %s37_s8  ;;  %v6_v3 = vld [vmem:[#allocation1] sm:$0x1]  }
   0xc   :  { %v15_v4 = vld [vmem:[#allocation1] sm:$0x1]   ;;  %8 = vst.msk [vmem:[#allocation0] sm:$0x1] %vm7_vm0, %v6_v3  }
   0xe   :  { %16 = vrot.lane.b32.xlu0 %v15_v4, %s38_s9 }
  0x7c   :  { %v11_v5 = vpop.permute.xlu0 %10  }
  0x7d   :  { %v23_v6 = vpop.permute.xlu1 %22   ;;  %14 = vst.msk [vmem:[#allocation0 + $0x1] sm:$0x1] %vm7_vm0, %v11_v5  }
  0x7e   :  { %26 = vst.msk [vmem:[#allocation0 + $0x3] sm:$0x1] %vm7_vm0, %v23_v6  }
  0x80   :  { %v17_v7 = vpop.permute.xlu0 %16  }
  0x81   :  { %20 = vst.msk [vmem:[#allocation0 + $0x2] sm:$0x1] %vm7_vm0, %v17_v7  }
  0x88   :  { %v30_v8 = vld [vmem:[#allocation0] sm:$0xf] }
  0x89   :  { %32 = vst [vmem:[%s56_s1] sm:$0xf] %v30_v8 }

// kernel: transformer_layer.1
= control target key start
LH: loop header
LB: loop body
LE: loop exit
PB: predicated region body
PF: predicated region fallthrough
CT: control target
= control target key end

     0   :  { %v1755_v1 = vmov 0.0   ;;  %vm1756_vm0 = vmmov 0   ;;  %vm56_vm1 = vcmask 261120   ;;  %s2107_s0 = inlined_call_operand.vmem [shape: f32[16,32], index: 0, kind: input, shape index: {}]   ;;  %s2108_s1 = inlined_call_operand.vmem [shape: bf16[32,96], index: 1, kind: input, shape index: {}]   ;;  %s2109_s2 = inlined_call_operand.vmem [shape: bf16[32,32], index: 2, kind: input, shape index: {}]   ;;  %s2110_s3 = inlined_call_operand.vmem [shape: bf16[32,128], index: 3, kind: input, shape index: {}]   ;;  %s2111_s4 = inlined_call_operand.vmem [shape: bf16[128,32], index: 4, kind: input, shape index: {}]   ;;  %s2112_s5 = inlined_call_operand.vmem [shape: f32[8,128], index: 5, kind: input, shape index: {}]   ;;  %s2113_s6 = inlined_call_operand.hbm [shape: f32[16,32], index: 6, kind: output, shape index: {}]  }
   0x1   :  { %v1673_v0 = vld [vmem:[%s2108_s1] sm:$0xff]   ;;  %1491 = vmatprep.subr.bf16.mxu0 %v1755_v1  ;;  %1511 = vmatprep.subr.bf16.mxu1 %v1755_v1  ;;  %v1674_v2 = vld [vmem:[%s2108_s1 + $0x8] sm:$0xff]  }
   0x2   :  { %1492 = vmatpush3.bf16.msra.mxu0 %v1673_v0  ;;  %1495 = vmatprep.mubr.msk.bf16.mxu0 %vm1756_vm0, %v1755_v1  ;;  %v1815_v3 = vld [vmem:[%s2107_s0] sm:$0xff]  ;;  %v1820_v4 = vld [vmem:[%s2107_s0 + $0x8] sm:$0xff] }
   0x3   :  { %1493 = vmatprep.subr.bf16.mxu0 %v1755_v1  ;;  %1513 = vmatprep.mubr.msk.bf16.mxu1 %vm1756_vm0, %v1755_v1  ;;  %v35_v5 = vpack.c.bf16 %v1820_v4, %v1815_v3 }
   0x6   :  { %1494 = vmatpush3.bf16.msra.mxu0 %v1674_v2 }
   0x7   :  { %1499 = vmatprep.subr.bf16.mxu0 %v1755_v1 }
   0x9   :  { %1496 = vmatmul.mubr.msk.bf16.vlgmr.msra.gmra.mrb[0].mxu0 %vm56_vm1, %v35_v5 }
   0xa   :  { %1501 = vmatprep.mubr.msk.bf16.mxu0 %vm1756_vm0, %v1755_v1 }
   0xb   :  { %11 = vsyncpa [#allocation3], 0  ;;  %v1398_v6 = vld [vmem:[%s2112_s5 + $0x1] ss:$0 sm:$0xff]  ;;  %s1757_s29 = smov 56   ;;  %s1758_s30 = smov 104  }
   0xc   :  { %s1759_s7 = smov 120   ;;  %s1760_s8 = smov 80   ;;  %vm132_vm2 = vcmask 64512   ;;  %vm631_vm3 = vcmask 1043456   ;;  %vm1037_vm4 = vcmask 130048   ;;  %vm1040_vm5 = vcmask 195584  }
   0xd   :  { %s1761_s9 = smov 112   ;;  %s1762_s10 = smov 8  }
   0xe   :  { %s1763_s15 = smov 16   ;;  %s1764_s16 = smov 24  }
   0xf   :  { %s1765_s22 = smov [#allocation2]  }
  0x10   :  { %s1387_s23 = sshll.u32 %s1765_s22, 4  ;;  %s1388_s23 = int_to_ptr.vmem [resolvable:$true] %s1387_s23 }
  0x11   :  { %p1736_p1 = scmp.lt.s32.totalorder %s1388_s23, %s1388_s23 }
  0xdc   :  { %v94_v7 = vpop.f32.mrb[0].mxu0 }
  0xdd   :  { %v1497_v8 = vpop.f32.mrb[1].mxu0  ;;  %v95_v10 = vadd.f32 %v1398_v6, %v94_v7 }
  0xde   :  { %v97_v9 = vpop.f32.mrb[2].mxu0 }
  0xdf   :  { %v98_v11 = vadd.f32 %v1398_v6, %v97_v9  ;;  %v1498_v12 = vpop.f32.mrb[3].mxu0  ;;  %v121_v14 = vpack.c.bf16 %v95_v10, %v95_v10 }
  0xe1   :  { %v1653_v13 = vpack.i.bf16 %v98_v11, %v95_v10  ;;  %v122_v15 = vpack.c.bf16 %v98_v11, %v98_v11 }
  0xe3   :  { %1654 = vrot.lane.b32.xlu1 %v1653_v13, %s1757_s29  ;;  %1644 = vrot.lane.b32.xlu0 %v1653_v13, %s1758_s30 }
  0xe7   :  { %130 = vrot.lane.b32.xlu1 %v121_v14, %s1759_s7  ;;  %1649 = vrot.lane.b32.xlu0 %v1653_v13, %s1760_s8 }
  0xeb   :  { %180 = vrot.lane.b32.xlu0 %v122_v15, %s1759_s7 }
 0x155   :  { %v1655_v16 = vpop.permute.xlu1 %1654  ;;  %v1645_v17 = vpop.permute.xlu0 %1644 }
 0x156   :  { %v1647_v18 = vunpack.i.h.bf16 %v1645_v17  ;;  %v1646_v19 = vunpack.i.l.bf16 %v1645_v17  ;;  %v1656_v27 = vunpack.i.l.bf16 %v1655_v16  ;;  %v1657_v30 = vunpack.i.h.bf16 %v1655_v16 }
 0x158   :  { %v1836_v20 = vpack.c.bf16 %v1647_v18, %v1647_v18  ;;  %v1838_v21 = vpack.c.bf16 %v1646_v19, %v1646_v19  ;;  %v1854_v32 = vpack.c.bf16 %v1656_v27, %v1656_v27  ;;  %v1856_v33 = vpack.c.bf16 %v1657_v30, %v1657_v30 }
 0x159   :  { %v131_v22 = vpop.permute.xlu1 %130  ;;  %v1650_v23 = vpop.permute.xlu0 %1649 }
 0x15a   :  { %v137_v24 = vsel %vm132_vm2, %v131_v22, 0  ;;  %v1652_v25 = vunpack.i.h.bf16 %v1650_v23  ;;  %v1651_v26 = vunpack.i.l.bf16 %v1650_v23  ;;  %229 = vrot.lane.b32.xlu1 %v1838_v21, %s1759_s7  ;;  %278 = vrot.lane.b32.xlu0 %v1836_v20, %s1759_s7 }
 0x15b   :  { %1500 = vmatpush3.bf16.xpose.msra.mxu0 %v137_v24 }
 0x15c   :  { %v1845_v28 = vpack.c.bf16 %v1652_v25, %v1652_v25  ;;  %v1847_v29 = vpack.c.bf16 %v1651_v26, %v1651_v26  ;;  %1505 = vmatprep.subr.bf16.mxu0 %v1755_v1 }
 0x15d   :  { %v181_v31 = vpop.permute.xlu0 %180 }
 0x15e   :  { %327 = vrot.lane.b32.xlu1 %v1847_v29, %s1759_s7  ;;  %376 = vrot.lane.b32.xlu0 %v1845_v28, %s1759_s7  ;;  %v186_v34 = vsel %vm132_vm2, %v181_v31, 0 }
 0x162   :  { %1502 = vmatmul.mubr.msk.bf16.vlgmr.msra.gmra.mrb[4].mxu0 %vm132_vm2, %v121_v14  ;;  %425 = vrot.lane.b32.xlu1 %v1854_v32, %s1759_s7 }
 0x163   :  { %474 = vrot.lane.b32.xlu0 %v1856_v33, %s1759_s7  ;;  %1506 = vmatpush3.bf16.xpose.msra.mxu0 %v186_v34 }
 0x164   :  { %1507 = vmatprep.mubr.msk.bf16.mxu0 %vm1756_vm0, %v1755_v1  ;;  %1517 = vmatprep.subr.bf16.mxu0 %v1755_v1 }
 0x166   :  { %675 = vrot.lane.b32.xlu1 %v122_v15, %s1761_s9 }
 0x167   :  { %626 = vrot.lane.b32.xlu0 %v121_v14, %s1761_s9 }
 0x16a   :  { %1508 = vmatmul.mubr.msk.bf16.vlgmr.msra.gmra.mrb[8].mxu0 %vm132_vm2, %v122_v15 }
 0x16b   :  { %1519 = vmatprep.mubr.msk.bf16.mxu0 %vm1756_vm0, %v1755_v1 }
 0x1cc   :  { %v230_v35 = vpop.permute.xlu1 %229  ;;  %v279_v36 = vpop.permute.xlu0 %278 }
 0x1cd   :  { %v284_v37 = vsel %vm132_vm2, %v279_v36, 0  ;;  %v235_v38 = vsel %vm132_vm2, %v230_v35, 0 }
 0x1ce   :  { %1512 = vmatpush3.bf16.xpose.msra.mxu1 %v235_v38  ;;  %1518 = vmatpush3.bf16.xpose.msra.mxu0 %v284_v37 }
 0x1cf   :  { %1523 = vmatprep.subr.bf16.mxu1 %v1755_v1  ;;  %1529 = vmatprep.subr.bf16.mxu0 %v1755_v1 }
 0x1d0   :  { %v328_v39 = vpop.permute.xlu1 %327  ;;  %v377_v40 = vpop.permute.xlu0 %376 }
 0x1d1   :  { %v333_v41 = vsel %vm132_vm2, %v328_v39, 0  ;;  %v382_v42 = vsel %vm132_vm2, %v377_v40, 0 }
 0x1d4   :  { %v426_v43 = vpop.permute.xlu1 %425 }
 0x1d5   :  { %1514 = vmatmul.mubr.msk.bf16.vlgmr.msra.gmra.mrb[0].mxu1 %vm132_vm2, %v1838_v21  ;;  %1520 = vmatmul.mubr.msk.bf16.vlgmr.msra.gmra.mrb[12].mxu0 %vm132_vm2, %v1836_v20  ;;  %v475_v44 = vpop.permute.xlu0 %474  ;;  %v431_v45 = vsel %vm132_vm2, %v426_v43, 0 }
 0x1d6   :  { %1524 = vmatpush3.bf16.xpose.msra.mxu1 %v333_v41  ;;  %1530 = vmatpush3.bf16.xpose.msra.mxu0 %v382_v42  ;;  %v480_v46 = vsel %vm132_vm2, %v475_v44, 0 }
 0x1d7   :  { %1525 = vmatprep.mubr.msk.bf16.mxu1 %vm1756_vm0, %v1755_v1  ;;  %1531 = vmatprep.mubr.msk.bf16.mxu0 %vm1756_vm0, %v1755_v1 }
 0x1d8   :  { %1535 = vmatprep.subr.bf16.mxu1 %v1755_v1  ;;  %1541 = vmatprep.subr.bf16.mxu0 %v1755_v1  ;;  %v676_v47 = vpop.permute.xlu1 %675 }
 0x1d9   :  { %v627_v48 = vpop.permute.xlu0 %626  ;;  %v681_v49 = vsel %vm631_vm3, %v676_v47, 0 }
 0x1da   :  { %v633_v50 = vsel %vm631_vm3, %v627_v48, 0 }
 0x1dd   :  { %1526 = vmatmul.mubr.msk.bf16.vlgmr.msra.gmra.mrb[4].mxu1 %vm132_vm2, %v1847_v29  ;;  %1532 = vmatmul.mubr.msk.bf16.vlgmr.msra.gmra.mrb[16].mxu0 %vm132_vm2, %v1845_v28 }
 0x1de   :  { %1536 = vmatpush3.bf16.xpose.msra.mxu1 %v431_v45  ;;  %1542 = vmatpush3.bf16.xpose.msra.mxu0 %v480_v46 }
 0x1df   :  { %1537 = vmatprep.mubr.msk.bf16.mxu1 %vm1756_vm0, %v1755_v1  ;;  %1543 = vmatprep.mubr.msk.bf16.mxu0 %vm1756_vm0, %v1755_v1 }
 0x1e0   :  { %1547 = vmatprep.subr.bf16.mxu1 %v1755_v1  ;;  %1553 = vmatprep.subr.bf16.mxu0 %v1755_v1 }
 0x1e5   :  { %1538 = vmatmul.mubr.msk.bf16.vlgmr.msra.gmra.mrb[8].mxu1 %vm132_vm2, %v1854_v32  ;;  %1544 = vmatmul.mubr.msk.bf16.vlgmr.msra.gmra.mrb[20].mxu0 %vm132_vm2, %v1856_v33 }
 0x1e6   :  { %1548 = vmatpush3.bf16.msra.mxu1 %v633_v50  ;;  %1554 = vmatpush3.bf16.msra.mxu0 %v681_v49 }
 0x1e7   :  { %1549 = vmatprep.mubr.msk.bf16.mxu1 %vm1756_vm0, %v1755_v1  ;;  %1555 = vmatprep.mubr.msk.bf16.mxu0 %vm1756_vm0, %v1755_v1 }
 0x1e8   :  { %1559 = vmatprep.subr.bf16.mxu1 %v1755_v1  ;;  %1565 = vmatprep.subr.bf16.mxu0 %v1755_v1 }
 0x235   :  { %v173_v51 = vpop.f32.mrb[4].mxu0 }
 0x236   :  { %v522_v52 = vmul.f32 0.35355338, %v173_v51  ;;  %v1503_v53 = vpop.f32.mrb[5].mxu0 }
 0x237   :  { %v176_v54 = vpop.f32.mrb[6].mxu0 }
 0x238   :  { %v1504_v55 = vpop.f32.mrb[7].mxu0  ;;  %v530_v56 = vsel %vm132_vm2, %v522_v52, -inf }
 0x239   :  { %531 = vmax.xlane.f32.xlu1 %v530_v56 }
 0x23d   :  { %v222_v57 = vpop.f32.mrb[8].mxu0 }
 0x23e   :  { %v523_v58 = vmul.f32 0.35355338, %v222_v57  ;;  %v1509_v59 = vpop.f32.mrb[9].mxu0 }
 0x23f   :  { %v225_v60 = vpop.f32.mrb[10].mxu0 }
 0x240   :  { %v1510_v61 = vpop.f32.mrb[11].mxu0  ;;  %v533_v62 = vsel %vm132_vm2, %v523_v58, -inf }
 0x241   :  { %534 = vmax.xlane.f32.xlu0 %v533_v62 }
 0x2a8   :  { %v271_v63 = vpop.f32.mrb[0].mxu1  ;;  %v320_v0 = vpop.f32.mrb[12].mxu0 }
 0x2a9   :  { %v524_v2 = vmul.f32 0.35355338, %v271_v63  ;;  %v525_v5 = vmul.f32 0.35355338, %v320_v0  ;;  %v1515_v6 = vpop.f32.mrb[1].mxu1  ;;  %v1521_v7 = vpop.f32.mrb[13].mxu0 }
 0x2aa   :  { %v274_v8 = vpop.f32.mrb[2].mxu1  ;;  %v323_v9 = vpop.f32.mrb[14].mxu0 }
 0x2ab   :  { %v1516_v10 = vpop.f32.mrb[3].mxu1  ;;  %v1522_v11 = vpop.f32.mrb[15].mxu0  ;;  %v536_v12 = vsel %vm132_vm2, %v524_v2, -inf  ;;  %v539_v13 = vsel %vm132_vm2, %v525_v5, -inf }
 0x2ac   :  { %537 = vmax.xlane.f32.xlu0 %v536_v12  ;;  %540 = vmax.xlane.f32.xlu1 %v539_v13 }
 0x2b0   :  { %v369_v14 = vpop.f32.mrb[4].mxu1  ;;  %v418_v15 = vpop.f32.mrb[16].mxu0 }
 0x2b1   :  { %v1916_v16 = vmul.f32 0.35355338, %v369_v14  ;;  %v527_v17 = vmul.f32 0.35355338, %v418_v15  ;;  %v1527_v18 = vpop.f32.mrb[5].mxu1  ;;  %v1533_v19 = vpop.f32.mrb[17].mxu0 }
 0x2b2   :  { %v372_v22 = vpop.f32.mrb[6].mxu1  ;;  %v421_v23 = vpop.f32.mrb[18].mxu0 }
 0x2b3   :  { %v1528_v24 = vpop.f32.mrb[7].mxu1  ;;  %v1534_v25 = vpop.f32.mrb[19].mxu0  ;;  %v542_v26 = vsel %vm132_vm2, %v1916_v16, -inf  ;;  %v545_v27 = vsel %vm132_vm2, %v527_v17, -inf }
 0x2b4   :  { %543 = vmax.xlane.f32.xlu0 %v542_v26  ;;  %546 = vmax.xlane.f32.xlu1 %v545_v27 }
 0x2b8   :  { %v467_v30 = vpop.f32.mrb[8].mxu1  ;;  %v516_v31 = vpop.f32.mrb[20].mxu0 }
 0x2b9   :  { %v1921_v34 = vmul.f32 0.35355338, %v467_v30  ;;  %v529_v35 = vmul.f32 0.35355338, %v516_v31  ;;  %v1539_v36 = vpop.f32.mrb[9].mxu1  ;;  %v1545_v37 = vpop.f32.mrb[21].mxu0 }
 0x2ba   :  { %v470_v38 = vpop.f32.mrb[10].mxu1  ;;  %v519_v39 = vpop.f32.mrb[22].mxu0 }
 0x2bb   :  { %v1540_v40 = vpop.f32.mrb[11].mxu1  ;;  %v1546_v41 = vpop.f32.mrb[23].mxu0  ;;  %v548_v42 = vsel %vm132_vm2, %v1921_v34, -inf  ;;  %v551_v43 = vsel %vm132_vm2, %v529_v35, -inf }
 0x2bc   :  { %549 = vmax.xlane.f32.xlu0 %v548_v42  ;;  %552 = vmax.xlane.f32.xlu1 %v551_v43 }
 0x2c6   :  { %v532_v44 = vpop.xlane.xlu1 %531 }
 0x2c7   :  { %v554_v46 = vsub.f32 %v522_v52, %v532_v44 }
 0x2c9   :  { %v562_v48 = vmul.f32 1.442695, %v554_v46 }
 0x2cb   :  { %1687 = vpow2.f32 %v562_v48 }
 0x2cd   :  { %723 = vrot.lane.b32.xlu1 %v1838_v21, %s1761_s9 }
 0x2ce   :  { %v535_v45 = vpop.xlane.xlu0 %534 }
 0x2cf   :  { %v555_v47 = vsub.f32 %v523_v58, %v535_v45 }
 0x2d1   :  { %v564_v49 = vmul.f32 1.442695, %v555_v47 }
 0x2d2   :  { %771 = vrot.lane.b32.xlu0 %v1836_v20, %s1761_s9 }
 0x2d3   :  { %1689 = vpow2.f32 %v564_v49 }
 0x2d5   :  { %v1688_v50 = vpop.eup %1687 }
 0x2d6   :  { %v578_v53 = vsel %vm132_vm2, %v1688_v50, 0.0 }
 0x2dd   :  { %v1690_v51 = vpop.eup %1689 }
 0x2de   :  { %v581_v54 = vsel %vm132_vm2, %v1690_v51, 0.0 }
 0x2f1   :  { %579 = vadd.xlane.f32.xlu0 %v578_v53  ;;  %582 = vadd.xlane.f32.xlu1 %v581_v54 }
 0x302   :  { %819 = vrot.lane.b32.xlu1 %v1847_v29, %s1761_s9 }
 0x339   :  { %v538_v20 = vpop.xlane.xlu0 %537  ;;  %v541_v21 = vpop.xlane.xlu1 %540 }
 0x33a   :  { %v556_v55 = vsub.f32 %v524_v2, %v538_v20  ;;  %v557_v52 = vsub.f32 %v525_v5, %v541_v21 }
 0x33c   :  { %v566_v56 = vmul.f32 1.442695, %v556_v55  ;;  %v568_v57 = vmul.f32 1.442695, %v557_v52 }
 0x33e   :  { %1691 = vpow2.f32 %v566_v56 }
 0x33f   :  { %1693 = vpow2.f32 %v568_v57 }
 0x341   :  { %v547_v58 = vpop.xlane.xlu1 %546  ;;  %v544_v10 = vpop.xlane.xlu0 %543 }
 0x342   :  { %v559_v59 = vsub.f32 %v527_v17, %v547_v58  ;;  %v558_v11 = vsub.f32 %v1916_v16, %v544_v10 }
 0x344   :  { %v572_v60 = vmul.f32 1.442695, %v559_v59  ;;  %v570_v13 = vmul.f32 1.442695, %v558_v11 }
 0x346   :  { %1695 = vpow2.f32 %v572_v60 }
 0x348   :  { %v1934_v61 = vpop.eup %1691 }
 0x349   :  { %v1936_v62 = vpop.eup %1693  ;;  %v553_v63 = vpop.xlane.xlu1 %552  ;;  %v584_v29 = vsel %vm132_vm2, %v1934_v61, 0.0 }
 0x34a   :  { %v561_v0 = vsub.f32 %v529_v35, %v553_v63  ;;  %585 = vadd.xlane.f32.xlu0 %v584_v29  ;;  %v587_v2 = vsel %vm132_vm2, %v1936_v62, 0.0  ;;  %v550_v12 = vpop.xlane.xlu0 %549 }
 0x34b   :  { %588 = vadd.xlane.f32.xlu1 %v587_v2  ;;  %v560_v14 = vsub.f32 %v1921_v34, %v550_v12 }
 0x34c   :  { %v576_v5 = vmul.f32 1.442695, %v561_v0 }
 0x34d   :  { %v574_v15 = vmul.f32 1.442695, %v560_v14  ;;  %v724_v18 = vpop.permute.xlu1 %723 }
 0x34e   :  { %1697 = vpow2.f32 %v576_v5  ;;  %v772_v17 = vpop.permute.xlu0 %771  ;;  %v729_v34 = vsel %vm631_vm3, %v724_v18, 0 }
 0x34f   :  { %1699 = vpow2.f32 %v570_v13  ;;  %v777_v35 = vsel %vm631_vm3, %v772_v17, 0 }
 0x350   :  { %v1942_v6 = vpop.eup %1695  ;;  %1701 = vpow2.f32 %v574_v15 }
 0x351   :  { %v593_v7 = vsel %vm132_vm2, %v1942_v6, 0.0 }
 0x352   :  { %594 = vadd.xlane.f32.xlu1 %v593_v7 }
 0x358   :  { %v1946_v8 = vpop.eup %1697 }
 0x359   :  { %v599_v9 = vsel %vm132_vm2, %v1946_v8, 0.0  ;;  %v1956_v19 = vpop.eup %1699 }
 0x35a   :  { %600 = vadd.xlane.f32.xlu1 %v599_v9  ;;  %v1960_v16 = vpop.eup %1701 }
 0x360   :  { %867 = vrot.lane.b32.xlu0 %v1845_v28, %s1761_s9  ;;  %v590_v28 = vsel %vm132_vm2, %v1956_v19, 0.0 }
 0x36b   :  { %915 = vrot.lane.b32.xlu1 %v1854_v32, %s1761_s9  ;;  %v596_v32 = vsel %vm132_vm2, %v1960_v16, 0.0 }
 0x37e   :  { %v580_v22 = vpop.xlane.xlu0 %579  ;;  %v583_v23 = vpop.xlane.xlu1 %582 }
 0x37f   :  { %1703 = vrcp.f32 %v580_v22  ;;  %591 = vadd.xlane.f32.xlu0 %v590_v28 }
 0x380   :  { %1705 = vrcp.f32 %v583_v23 }
 0x382   :  { %v820_v36 = vpop.permute.xlu1 %819 }
 0x383   :  { %597 = vadd.xlane.f32.xlu0 %v596_v32  ;;  %v825_v47 = vsel %vm631_vm3, %v820_v36, 0 }
 0x389   :  { %v1704_v24 = vpop.eup %1703 }
 0x38a   :  { %v1706_v25 = vpop.eup %1705  ;;  %v610_v26 = vmul.f32 %v1704_v24, %v1688_v50  ;;  %v1675_v24 = vld [vmem:[%s2109_s2] sm:$0xff]  }
 0x38b   :  { %v611_v27 = vmul.f32 %v1706_v25, %v1690_v51 }
 0x38c   :  { %v618_v30 = vpack.c.bf16 %v610_v26, %v610_v26 }
 0x38d   :  { %v619_v31 = vpack.c.bf16 %v611_v27, %v611_v27 }
 0x38e   :  { %1550 = vmatmul.mubr.msk.bf16.vlgmr.msra.gmra.mrb[12].mxu1 %vm132_vm2, %v618_v30 }
 0x38f   :  { %1556 = vmatmul.mubr.msk.bf16.vlgmr.msra.gmra.mrb[24].mxu0 %vm132_vm2, %v619_v31  ;;  %1560 = vmatpush3.bf16.msra.mxu1 %v729_v34  ;;  %v1676_v34 = vld [vmem:[%s2109_s2 + $0x8] sm:$0xff]  }
 0x390   :  { %1566 = vmatpush3.bf16.msra.mxu0 %v777_v35  ;;  %1561 = vmatprep.mubr.msk.bf16.mxu1 %vm1756_vm0, %v1755_v1 }
 0x391   :  { %1567 = vmatprep.mubr.msk.bf16.mxu0 %vm1756_vm0, %v1755_v1  ;;  %1571 = vmatprep.subr.bf16.mxu1 %v1755_v1 }
 0x392   :  { %1577 = vmatprep.subr.bf16.mxu0 %v1755_v1 }
 0x399   :  { %963 = vrot.lane.b32.xlu0 %v1856_v33, %s1761_s9 }
 0x3d7   :  { %v586_v37 = vpop.xlane.xlu0 %585 }
 0x3d8   :  { %1707 = vrcp.f32 %v586_v37  ;;  %v589_v38 = vpop.xlane.xlu1 %588 }
 0x3d9   :  { %1709 = vrcp.f32 %v589_v38 }
 0x3db   :  { %v868_v44 = vpop.permute.xlu0 %867 }
 0x3dc   :  { %v873_v33 = vsel %vm631_vm3, %v868_v44, 0 }
 0x3df   :  { %v595_v39 = vpop.xlane.xlu1 %594 }
 0x3e0   :  { %1711 = vrcp.f32 %v595_v39 }
 0x3e2   :  { %v1708_v40 = vpop.eup %1707 }
 0x3e3   :  { %v1710_v41 = vpop.eup %1709  ;;  %v612_v42 = vmul.f32 %v1708_v40, %v1934_v61 }
 0x3e4   :  { %v613_v43 = vmul.f32 %v1710_v41, %v1936_v62 }
 0x3e5   :  { %v620_v45 = vpack.c.bf16 %v612_v42, %v612_v42 }
 0x3e6   :  { %v621_v46 = vpack.c.bf16 %v613_v43, %v613_v43 }
 0x3e7   :  { %1562 = vmatmul.mubr.msk.bf16.vlgmr.msra.gmra.mrb[16].mxu1 %vm132_vm2, %v620_v45  ;;  %v601_v51 = vpop.xlane.xlu1 %600 }
 0x3e8   :  { %1568 = vmatmul.mubr.msk.bf16.vlgmr.msra.gmra.mrb[28].mxu0 %vm132_vm2, %v621_v46  ;;  %1572 = vmatpush3.bf16.msra.mxu1 %v825_v47  ;;  %1713 = vrcp.f32 %v601_v51 }
 0x3e9   :  { %1578 = vmatpush3.bf16.msra.mxu0 %v873_v33  ;;  %1579 = vmatprep.mubr.msk.bf16.mxu0 %vm1756_vm0, %v1755_v1 }
 0x3ea   :  { %1589 = vmatprep.subr.bf16.mxu0 %v1755_v1  ;;  %1573 = vmatprep.mubr.msk.bf16.mxu1 %vm1756_vm0, %v1755_v1  ;;  %v1712_v48 = vpop.eup %1711 }
 0x3eb   :  { %1583 = vmatprep.subr.bf16.mxu1 %v1755_v1  ;;  %v615_v49 = vmul.f32 %v1712_v48, %v1942_v6  ;;  %v916_v59 = vpop.permute.xlu1 %915 }
 0x3ec   :  { %v921_v62 = vsel %vm631_vm3, %v916_v59, 0 }
 0x3ed   :  { %v623_v50 = vpack.c.bf16 %v615_v49, %v615_v49 }
 0x3f0   :  { %1580 = vmatmul.mubr.msk.bf16.vlgmr.msra.gmra.mrb[32].mxu0 %vm132_vm2, %v623_v50 }
 0x3f1   :  { %1591 = vmatprep.mubr.msk.bf16.mxu0 %vm1756_vm0, %v1755_v1 }
 0x3f2   :  { %v1714_v54 = vpop.eup %1713 }
 0x3f3   :  { %v617_v21 = vmul.f32 %v1714_v54, %v1946_v8 }
 0x3f5   :  { %v625_v57 = vpack.c.bf16 %v617_v21, %v617_v21 }
 0x40c   :  { %v592_v53 = vpop.xlane.xlu0 %591 }
 0x40d   :  { %1715 = vrcp.f32 %v592_v53 }
 0x410   :  { %v598_v20 = vpop.xlane.xlu0 %597 }
 0x411   :  { %1717 = vrcp.f32 %v598_v20 }
 0x414   :  { %v964_v55 = vpop.permute.xlu0 %963 }
 0x415   :  { %v969_v52 = vsel %vm631_vm3, %v964_v55, 0 }
 0x416   :  { %1590 = vmatpush3.bf16.msra.mxu0 %v969_v52 }
 0x417   :  { %v1716_v56 = vpop.eup %1715  ;;  %1603 = vmatprep.subr.bf16.mxu0 %v1755_v1 }
 0x418   :  { %v614_v58 = vmul.f32 %v1716_v56, %v1956_v19 }
 0x419   :  { %1592 = vmatmul.mubr.msk.bf16.vlgmr.msra.gmra.mrb[36].mxu0 %vm132_vm2, %v625_v57  ;;  %v1418_v57 = vld [vmem:[%s2112_s5 + $0x2] ss:$0 sm:$0xff] }
 0x41a   :  { %v622_v60 = vpack.c.bf16 %v614_v58, %v614_v58  ;;  %1607 = vmatprep.mubr.msk.bf16.mxu0 %vm1756_vm0, %v1755_v1 }
 0x41b   :  { %v1718_v61 = vpop.eup %1717 }
 0x41c   :  { %1574 = vmatmul.mubr.msk.bf16.vlgmr.msra.gmra.mrb[20].mxu1 %vm132_vm2, %v622_v60  ;;  %v616_v63 = vmul.f32 %v1718_v61, %v1960_v16 }
 0x41d   :  { %1584 = vmatpush3.bf16.msra.mxu1 %v921_v62  ;;  %1585 = vmatprep.mubr.msk.bf16.mxu1 %vm1756_vm0, %v1755_v1 }
 0x41e   :  { %1595 = vmatprep.subr.bf16.mxu1 %v1755_v1  ;;  %v624_v29 = vpack.c.bf16 %v616_v63, %v616_v63 }
 0x424   :  { %1586 = vmatmul.mubr.msk.bf16.vlgmr.msra.gmra.mrb[24].mxu1 %vm132_vm2, %v624_v29 }
 0x425   :  { %1599 = vmatprep.mubr.msk.bf16.mxu1 %vm1756_vm0, %v1755_v1  ;;  %1596 = vmatpush3.bf16.msra.mxu1 %v1675_v24 }
 0x426   :  { %1597 = vmatprep.subr.bf16.mxu1 %v1755_v1 }
 0x429   :  { %1598 = vmatpush3.bf16.msra.mxu1 %v1676_v34 }
 0x42a   :  { %1611 = vmatprep.subr.bf16.mxu1 %v1755_v1 }
 0x461   :  { %v669_v0 = vpop.f32.mrb[12].mxu1 }
 0x462   :  { %v717_v2 = vpop.f32.mrb[24].mxu0  ;;  %v1551_v5 = vpop.f32.mrb[13].mxu1 }
 0x463   :  { %v1557_v6 = vpop.f32.mrb[25].mxu0  ;;  %v672_v7 = vpop.f32.mrb[14].mxu1 }
 0x464   :  { %v720_v8 = vpop.f32.mrb[26].mxu0  ;;  %v1552_v9 = vpop.f32.mrb[15].mxu1 }
 0x465   :  { %v1558_v10 = vpop.f32.mrb[27].mxu0 }
 0x4ba   :  { %v765_v11 = vpop.f32.mrb[16].mxu1 }
 0x4bb   :  { %v813_v12 = vpop.f32.mrb[28].mxu0  ;;  %v1563_v13 = vpop.f32.mrb[17].mxu1 }
 0x4bc   :  { %v1658_v14 = vpack.i.bf16 %v813_v12, %v765_v11  ;;  %v1569_v15 = vpop.f32.mrb[29].mxu0  ;;  %v768_v17 = vpop.f32.mrb[18].mxu1 }
 0x4bd   :  { %v816_v18 = vpop.f32.mrb[30].mxu0  ;;  %v1564_v19 = vpop.f32.mrb[19].mxu1  ;;  %v1678_v15 = vld [vmem:[%s2110_s3 + $0x8] sm:$0xff]   ;;  %v1679_v17 = vld [vmem:[%s2111_s4] sm:$0xff]  }
 0x4be   :  { %1659 = vrot.lane.b32.xlu1 %v1658_v14, %s1762_s10  ;;  %v1570_v22 = vpop.f32.mrb[31].mxu0 }
 0x4c3   :  { %v909_v23 = vpop.f32.mrb[32].mxu0 }
 0x4c4   :  { %v1581_v28 = vpop.f32.mrb[33].mxu0 }
 0x4c5   :  { %v912_v16 = vpop.f32.mrb[34].mxu0 }
 0x4c6   :  { %v1582_v32 = vpop.f32.mrb[35].mxu0 }
 0x4ec   :  { %v1005_v25 = vpop.f32.mrb[36].mxu0 }
 0x4ed   :  { %v1593_v26 = vpop.f32.mrb[37].mxu0 }
 0x4ee   :  { %v1008_v27 = vpop.f32.mrb[38].mxu0 }
 0x4ef   :  { %v861_v30 = vpop.f32.mrb[20].mxu1  ;;  %v1594_v31 = vpop.f32.mrb[39].mxu0 }
 0x4f0   :  { %v1663_v35 = vpack.i.bf16 %v909_v23, %v861_v30  ;;  %v1575_v36 = vpop.f32.mrb[21].mxu1  ;;  %v1423_v31 = vld [vmem:[%s2112_s5 + $0x5] ss:$0 sm:$0xff] }
 0x4f1   :  { %v864_v37 = vpop.f32.mrb[22].mxu1 }
 0x4f2   :  { %v1576_v38 = vpop.f32.mrb[23].mxu1  ;;  %1664 = vrot.lane.b32.xlu0 %v1663_v35, %s1763_s15 }
 0x4f3   :  { %v1680_v38 = vld [vmem:[%s2111_s4 + $0x8] sm:$0xff]  }
 0x4f7   :  { %v957_v39 = vpop.f32.mrb[24].mxu1 }
 0x4f8   :  { %v1668_v40 = vpack.i.bf16 %v1005_v25, %v957_v39  ;;  %v1587_v41 = vpop.f32.mrb[25].mxu1  ;;  %v1422_v25 = vld [vmem:[%s2112_s5 + $0x4] ss:$0 sm:$0xff]  ;;  %v1681_v39 = vld [vmem:[%s2111_s4 + $0x10] sm:$0xff]  }
 0x4f9   :  { %v960_v42 = vpop.f32.mrb[26].mxu1  ;;  %v1683_v41 = vld [vmem:[%s2111_s4 + $0x20] sm:$0xff]  }
 0x4fa   :  { %v1588_v43 = vpop.f32.mrb[27].mxu1  ;;  %1669 = vrot.lane.b32.xlu1 %v1668_v40, %s1764_s16  ;;  %v1682_v40 = vld [vmem:[%s2111_s4 + $0x18] sm:$0xff]   ;;  %v1684_v42 = vld [vmem:[%s2111_s4 + $0x28] sm:$0xff]  }
 0x4fb   :  { %v1685_v43 = vld [vmem:[%s2111_s4 + $0x30] sm:$0xff]  }
 0x530   :  { %v1660_v44 = vpop.permute.xlu1 %1659 }
 0x531   :  { %v1662_v46 = vunpack.i.h.bf16 %v1660_v44  ;;  %v1661_v47 = vunpack.i.l.bf16 %v1660_v44  ;;  %v1686_v44 = vld [vmem:[%s2111_s4 + $0x38] sm:$0xff]  }
 0x533   :  { %v1036_v50 = vsel %vm132_vm2, %v717_v2, %v1662_v46  ;;  %v1035_v51 = vsel %vm132_vm2, %v669_v0, %v1661_v47 }
 0x564   :  { %v1665_v45 = vpop.permute.xlu0 %1664 }
 0x565   :  { %v1667_v33 = vunpack.i.h.bf16 %v1665_v45  ;;  %v1666_v48 = vunpack.i.l.bf16 %v1665_v45  ;;  %v1424_v45 = vld [vmem:[%s2112_s5] ss:$0 sm:$0xff] }
 0x567   :  { %v1039_v20 = vsel %vm1037_vm4, %v1036_v50, %v1667_v33  ;;  %v1038_v21 = vsel %vm1037_vm4, %v1035_v51, %v1666_v48 }
 0x56c   :  { %v1670_v49 = vpop.permute.xlu1 %1669 }
 0x56d   :  { %v1672_v53 = vunpack.i.h.bf16 %v1670_v49  ;;  %v1671_v54 = vunpack.i.l.bf16 %v1670_v49 }
 0x56f   :  { %v1042_v55 = vsel %vm1040_vm5, %v1039_v20, %v1672_v53  ;;  %v1041_v52 = vsel %vm1040_vm5, %v1038_v21, %v1671_v54 }
 0x570   :  { %v1043_v56 = vpack.c.bf16 %v1042_v55, %v1041_v52 }
 0x572   :  { %1600 = vmatmul.mubr.msk.bf16.vlgmr.msra.gmra.mrb[28].mxu1 %vm56_vm1, %v1043_v56 }
 0x573   :  { %1627 = vmatprep.mubr.msk.bf16.mxu1 %vm1756_vm0, %v1755_v1  ;;  %1612 = vmatpush3.bf16.msra.mxu1 %v1679_v17 }
 0x574   :  { %1613 = vmatprep.subr.bf16.mxu1 %v1755_v1 }
 0x577   :  { %1614 = vmatpush3.bf16.msra.mxu1 %v1680_v38 }
 0x578   :  { %1615 = vmatprep.subr.bf16.mxu1 %v1755_v1 }
 0x57b   :  { %1616 = vmatpush3.bf16.msra.mxu1 %v1681_v39 }
 0x57c   :  { %1617 = vmatprep.subr.bf16.mxu1 %v1755_v1 }
 0x57f   :  { %1618 = vmatpush3.bf16.msra.mxu1 %v1682_v40 }
 0x580   :  { %1619 = vmatprep.subr.bf16.mxu1 %v1755_v1 }
 0x583   :  { %1620 = vmatpush3.bf16.msra.mxu1 %v1683_v41 }
 0x584   :  { %1621 = vmatprep.subr.bf16.mxu1 %v1755_v1 }
 0x587   :  { %1622 = vmatpush3.bf16.msra.mxu1 %v1684_v42 }
 0x588   :  { %1623 = vmatprep.subr.bf16.mxu1 %v1755_v1 }
 0x58b   :  { %1624 = vmatpush3.bf16.msra.mxu1 %v1685_v43 }
 0x58c   :  { %1625 = vmatprep.subr.bf16.mxu1 %v1755_v1 }
 0x58f   :  { %1626 = vmatpush3.bf16.msra.mxu1 %v1686_v44 }
 0x645   :  { %v1101_v58 = vpop.f32.mrb[28].mxu1 }
 0x646   :  { %v1102_v59 = vadd.f32 %v1418_v57, %v1101_v58  ;;  %v1601_v60 = vpop.f32.mrb[29].mxu1 }
 0x647   :  { %v1104_v61 = vpop.f32.mrb[30].mxu1 }
 0x648   :  { %v1105_v62 = vadd.f32 %v1418_v57, %v1104_v61  ;;  %v1602_v63 = vpop.f32.mrb[31].mxu1  ;;  %v1108_v29 = vadd.f32 %v1102_v59, %v1815_v3 }
 0x649   :  { %v1430_v63 = vld [vmem:[%s2112_s5 + $0x3] ss:$0 sm:$0xff] }
 0x64a   :  { %v1110_v0 = vsel %vm56_vm1, %v1108_v29, 0.0  ;;  %v1109_v2 = vadd.f32 %v1105_v62, %v1820_v4  ;;  %v1677_v4 = vld [vmem:[%s2110_s3] sm:$0xff]   ;;  %s1731_s3 = scalar_lea.vmem %s1388_s23, 256 }
 0x64b   :  { %1111 = vadd.xlane.f32.xlu0 %v1110_v0  ;;  %1604 = vmatpush3.bf16.msra.mxu0 %v1677_v4  ;;  %p1732_p0 = scmp.ne.s32.totalorder %s1388_s23, %s1731_s3  ;;  %p1737_p2 = scmp.lt.s32.totalorder %s1731_s3, %s1731_s3 }
 0x64c   :  { %v1113_v5 = vsel %vm56_vm1, %v1109_v2, 0.0  ;;  %1605 = vmatprep.subr.bf16.mxu0 %v1755_v1 }
 0x64d   :  { %1114 = vadd.xlane.f32.xlu1 %v1113_v5  ;;  %p1738_p3 = por %p1737_p2, %p1736_p1 }
 0x64f   :  { %1606 = vmatpush3.bf16.msra.mxu0 %v1678_v15  ;;  %p1739_p4 = pnand %p1738_p3, %p1732_p0 }
 0x6d8   :  { %v1112_v6 = vpop.xlane.xlu0 %1111 }
 0x6d9   :  { %v1117_v7 = vmul.f32 0.03125, %v1112_v6 }
 0x6da   :  { %v1115_v8 = vpop.xlane.xlu1 %1114 }
 0x6db   :  { %v1119_v9 = vsub.f32 %v1108_v29, %v1117_v7  ;;  %v1118_v10 = vmul.f32 0.03125, %v1115_v8 }
 0x6dd   :  { %v1120_v11 = vsub.f32 %v1109_v2, %v1118_v10  ;;  %v1121_v12 = vmul.f32 %v1119_v9, %v1119_v9 }
 0x6df   :  { %v1123_v13 = vsel %vm56_vm1, %v1121_v12, 0.0  ;;  %v1122_v14 = vmul.f32 %v1120_v11, %v1120_v11 }
 0x6e0   :  { %1124 = vadd.xlane.f32.xlu0 %v1123_v13 }
 0x6e1   :  { %v1126_v3 = vsel %vm56_vm1, %v1122_v14, 0.0 }
 0x6e4   :  { %1127 = vadd.xlane.f32.xlu0 %v1126_v3 }
 0x76d   :  { %v1125_v18 = vpop.xlane.xlu0 %1124 }
 0x76e   :  { %v1129_v19 = vmul.f32 0.03125, %v1125_v18 }
 0x770   :  { %v1131_v22 = vadd.f32 1e-05, %v1129_v19 }
 0x771   :  { %v1128_v23 = vpop.xlane.xlu0 %1127 }
 0x772   :  { %1719 = vrsqrt.f32 %v1131_v22  ;;  %v1130_v28 = vmul.f32 0.03125, %v1128_v23 }
 0x774   :  { %v1132_v16 = vadd.f32 1e-05, %v1130_v28 }
 0x776   :  { %1721 = vrsqrt.f32 %v1132_v16 }
 0x77c   :  { %v1720_v32 = vpop.eup %1719 }
 0x77d   :  { %v1135_v24 = vmul.f32 %v1720_v32, %v1119_v9 }
 0x77f   :  { %v1141_v27 = vmul.f32 %v1422_v25, %v1135_v24 }
 0x780   :  { %v1722_v26 = vpop.eup %1721 }
 0x781   :  { %v1136_v30 = vmul.f32 %v1722_v26, %v1120_v11  ;;  %v1147_v35 = vadd.f32 %v1423_v31, %v1141_v27  ;;  %v1439_v27 = vld [vmem:[%s2112_s5 + $0x6] ss:$0 sm:$0xff] }
 0x783   :  { %v1142_v34 = vmul.f32 %v1422_v25, %v1136_v30 }
 0x785   :  { %v1148_v36 = vadd.f32 %v1423_v31, %v1142_v34  ;;  %v1440_v34 = vld [vmem:[%s2112_s5 + $0x7] ss:$0 sm:$0xff] }
 0x787   :  { %v1149_v37 = vpack.c.bf16 %v1148_v36, %v1147_v35 }
 0x789   :  { %1608 = vmatmul.mubr.msk.bf16.vlgmr.msra.gmra.mrb[40].mxu0 %vm56_vm1, %v1149_v37 }
 0x85c   :  { %v1207_v46 = vpop.f32.mrb[40].mxu0 }
 0x85d   :  { %v1208_v47 = vadd.f32 %v1424_v45, %v1207_v46  ;;  %v1609_v33 = vpop.f32.mrb[41].mxu0 }
 0x85e   :  { %v1210_v48 = vpop.f32.mrb[42].mxu0 }
 0x85f   :  { %v1216_v49 = vmin.f32 %v1208_v47, 0.0  ;;  %v1211_v50 = vadd.f32 %v1424_v45, %v1210_v48  ;;  %v1610_v51 = vpop.f32.mrb[43].mxu0  ;;  %vm1214_vm6 = vcmp.gt.f32.partialorder %v1208_v47, 0.0 }
 0x861   :  { %v1218_v53 = vmul.f32 1.442695, %v1216_v49  ;;  %v1217_v54 = vmin.f32 %v1211_v50, 0.0  ;;  %vm1215_vm7 = vcmp.gt.f32.partialorder %v1211_v50, 0.0 }
 0x863   :  { %1723 = vpow2.f32 %v1218_v53  ;;  %v1220_v1 = vmul.f32 1.442695, %v1217_v54 }
 0x865   :  { %1725 = vpow2.f32 %v1220_v1 }
 0x86d   :  { %v1724_v20 = vpop.eup %1723 }
 0x86e   :  { %v1428_v21 = vadd.f32 -1.0, %v1724_v20 }
 0x86f   :  { %v1726_v55 = vpop.eup %1725 }
 0x870   :  { %v1224_v52 = vmul.f32 1.6732632, %v1428_v21  ;;  %v1429_v56 = vadd.f32 -1.0, %v1726_v55 }
 0x872   :  { %v1226_v57 = vsel %vm1214_vm6, %v1208_v47, %v1224_v52  ;;  %v1225_v58 = vmul.f32 1.6732632, %v1429_v56 }
 0x873   :  { %v1228_v60 = vmul.f32 1.050701, %v1226_v57 }
 0x874   :  { %v1227_v59 = vsel %vm1215_vm7, %v1211_v50, %v1225_v58 }
 0x875   :  { %v1229_v61 = vmul.f32 1.050701, %v1227_v59 }
 0x877   :  { %v1230_v62 = vpack.c.bf16 %v1229_v61, %v1228_v60 }
 0x879   :  { %1628 = vmatmul.mubr.bf16.vlgmr.msra.gmra.mrb[32].mxu1 %v1230_v62 }
 0x94c   :  { %v1333_v29 = vpop.f32.mrb[32].mxu1 }
 0x94d   :  { %v1334_v0 = vadd.f32 %v1430_v63, %v1333_v29  ;;  %v1629_v2 = vpop.f32.mrb[33].mxu1 }
 0x94e   :  { %v1336_v5 = vpop.f32.mrb[34].mxu1 }
 0x94f   :  { %v1337_v6 = vadd.f32 %v1430_v63, %v1336_v5  ;;  %v1630_v7 = vpop.f32.mrb[35].mxu1  ;;  %v1340_v8 = vadd.f32 %v1334_v0, %v1147_v35 }
 0x951   :  { %v1342_v9 = vsel %vm56_vm1, %v1340_v8, 0.0  ;;  %v1341_v10 = vadd.f32 %v1337_v6, %v1148_v36 }
 0x952   :  { %1343 = vadd.xlane.f32.xlu1 %v1342_v9 }
 0x953   :  { %v1345_v11 = vsel %vm56_vm1, %v1341_v10, 0.0 }
 0x954   :  { %1346 = vadd.xlane.f32.xlu0 %v1345_v11 }
 0x9df   :  { %v1344_v12 = vpop.xlane.xlu1 %1343 }
 0x9e0   :  { %v1348_v13 = vmul.f32 0.03125, %v1344_v12 }
 0x9e1   :  { %v1347_v14 = vpop.xlane.xlu0 %1346 }
 0x9e2   :  { %v1350_v3 = vsub.f32 %v1340_v8, %v1348_v13  ;;  %v1349_v4 = vmul.f32 0.03125, %v1347_v14 }
 0x9e4   :  { %v1351_v15 = vsub.f32 %v1341_v10, %v1349_v4  ;;  %v1352_v17 = vmul.f32 %v1350_v3, %v1350_v3 }
 0x9e6   :  { %v1354_v18 = vsel %vm56_vm1, %v1352_v17, 0.0  ;;  %v1353_v19 = vmul.f32 %v1351_v15, %v1351_v15 }
 0x9e7   :  { %1355 = vadd.xlane.f32.xlu1 %v1354_v18 }
 0x9e8   :  { %v1357_v22 = vsel %vm56_vm1, %v1353_v19, 0.0 }
 0x9e9   :  { %1358 = vadd.xlane.f32.xlu0 %v1357_v22 }
 0xa74   :  { %v1356_v23 = vpop.xlane.xlu1 %1355 }
 0xa75   :  { %v1360_v28 = vmul.f32 0.03125, %v1356_v23 }
 0xa76   :  { %v1359_v16 = vpop.xlane.xlu0 %1358 }
 0xa77   :  { %v1362_v32 = vadd.f32 1e-05, %v1360_v28  ;;  %v1361_v24 = vmul.f32 0.03125, %v1359_v16 }
 0xa79   :  { %1727 = vrsqrt.f32 %v1362_v32  ;;  %v1363_v25 = vadd.f32 1e-05, %v1361_v24 }
 0xa7b   :  { %1729 = vrsqrt.f32 %v1363_v25 }
 0xa83   :  { %v1728_v26 = vpop.eup %1727 }
 0xa84   :  { %v1366_v30 = vmul.f32 %v1728_v26, %v1350_v3 }
 0xa85   :  { %v1730_v31 = vpop.eup %1729 }
 0xa86   :  { %v1367_v35 = vmul.f32 %v1730_v31, %v1351_v15  ;;  %v1372_v36 = vmul.f32 %v1439_v27, %v1366_v30 }
 0xa88   :  { %v1373_v37 = vmul.f32 %v1439_v27, %v1367_v35  ;;  %v1378_v38 = vadd.f32 %v1440_v34, %v1372_v36 }
 0xa8a   :  { %v1379_v39 = vadd.f32 %v1440_v34, %v1373_v37  ;;  %1380 = vst.msk [vmem:[#allocation2] sm:$0xff] %vm56_vm1, %v1378_v38 }
 0xa8c   :  { %1381 = vst.msk [vmem:[#allocation2 + $0x8] sm:$0xff] %vm56_vm1, %v1379_v39 }
 0xa8d   :  { %1742 = shalt.err (!%p1739_p4)
}
 0xa8e   :  { %s1743_s25 = scalar_lea.hbm %s2113_s6, 256 }
 0xa8f   :  { %p1744_p5 = scmp.ne.s32.totalorder %s2113_s6, %s1743_s25  ;;  %p1747_p6 = scmp.lt.u32.totalorder %s1743_s25, %s2113_s6 }
 0xa91   :  { %p1749_p7 = pnand %p1747_p6, %p1744_p5 }
 0xa93   :  { %1752 = shalt.err (!%p1749_p7)
}
 0xa94   :  { %s1766_s1 = smov 128  }
 0xa95   :  { %1393 = dma.vmem_to_hbm [thread:$0]  %s1388_s23, 256, %s2113_s6, [#allocation3], %s1766_s1, %s1766_s1, %s1762_s10  }
 0xa96   :  { %1753 = dma.done.wait [#allocation3], 256  }
 0xa97   :  { %1754 = vsyncadd [#allocation3], 4294967040 }
 0xa98   :  { %1397 = vsyncpa [#allocation3], 1 }

</bundles_post_ra>
